<compile_context>
chip_gen: v7x
topology: tpu7x:2x2x1
jax: 0.10.0
libtpu: 0.0.40
codegen_flags: <defaults>
</compile_context>

<pallas_src>
import jax
import jax.numpy as jnp
from jax import lax
from jax.experimental import pallas as pl
from jax.experimental.pallas import tpu as pltpu


def _hash_u32(row, col, seed):
    """Stateless counter-based hash -> uint32 bits (murmur3-style finalizer).

    `row` / `col` may be broadcast-shaped ((tm,1) / (1,tv)); only the finalizer after the
    xor runs at full (tm, tv) width.
    """
    seed_mix = seed.astype(jnp.uint32) * jnp.uint32(0xC2B2AE3D) + jnp.uint32(0x27D4EB2F)
    col_mix = (col.astype(jnp.uint32) * jnp.uint32(0x85EBCA77)) ^ seed_mix
    x = (row.astype(jnp.uint32) * jnp.uint32(0x9E3779B1)) ^ col_mix   # broadcasts to full tile
    x = x ^ (x >> 16)
    x = x * jnp.uint32(0x7FEB352D)
    x = x ^ (x >> 15)
    x = x * jnp.uint32(0x846CA68B)
    x = x ^ (x >> 16)
    return x


def _uniform_from_bits(bits):
    """uint32 bits -> uniform float32 in (0, 1) via the mantissa bit trick (low bit forced)."""
    f = lax.bitcast_convert_type((bits >> 9) | jnp.uint32(0x3F800001), jnp.float32)
    return f - 1.0


# ---------------------------------------------------------------------------------
# Fused kernel: decoder projection + online log_softmax + gt gather + Gumbel-max.
#   grid = (M // tm, V // tv); vocab axis is the (last, "arbitrary") reduction axis.
#   Per-row outputs (finalized on the last vocab tile):
#     gt_logp[r]   = log p(target[r])          (loss_gt / get_ml_loss)
#     samp_logp[r] = log p(sampled[r])         (q and the lazy mc loss)
#     sampled[r]   = Gumbel-max sampled token  (sampler.nmt_sample, q = p_theta)
# ---------------------------------------------------------------------------------
def _fused_decoder_sampler_kernel(
    seed_ref,                                 # SMEM (1,) int32 (scalar prefetch)
    h_ref, w_ref, b_ref, tgt_ref,             # inputs
    gt_ref, sp_ref, idx_ref,                  # outputs, (tm, 1) each
    m_run, l_run, gt_acc, g_max, g_idx,       # VMEM scratch, (tm, 1) each
):
    i = pl.program_id(0)
    j = pl.program_id(1)
    nv = pl.num_programs(1)

    @pl.when(j == 0)
    def _init():
        m_run[...] = jnp.full_like(m_run, -jnp.inf)
        l_run[...] = jnp.zeros_like(l_run)
        gt_acc[...] = jnp.zeros_like(gt_acc)
        g_max[...] = jnp.full_like(g_max, -jnp.inf)
        g_idx[...] = jnp.zeros_like(g_idx)

    # --- decoder output projection on the MXU (bf16 in, f32 accumulate) ---
    logits = jnp.dot(h_ref[...], w_ref[...],
                     preferred_element_type=jnp.float32) + b_ref[...]
    tm, tv = logits.shape

    # broadcast-shaped global indices (no full (tm, tv) iotas)
    col = lax.broadcasted_iota(jnp.int32, (1, tv), 1) + j * tv    # (1, tv)
    row = lax.broadcasted_iota(jnp.int32, (tm, 1), 0) + i * tm    # (tm, 1)

    # --- tile-local gather of the ground-truth target logit (one vocab tile hits) ---
    gt_acc[...] += jnp.sum(jnp.where(col == tgt_ref[...], logits, 0.0),
                           axis=1, keepdims=True)

    # --- online log-softmax (running max / rescaled sum-exp) ---
    tile_max = jnp.max(logits, axis=1, keepdims=True)
    new_m = jnp.maximum(m_run[...], tile_max)
    p = jnp.exp(logits - new_m)                                   # reused by the Gumbel race
    l_run[...] = (l_run[...] * jnp.exp(m_run[...] - new_m)
                  + jnp.sum(p, axis=1, keepdims=True))
    m_run[...] = new_m

    # --- online Gumbel-max sampling (q = p_theta), counter-based RNG ---
    # key = exp(logit + gumbel - new_m) = p / e  with  e = -log(u) ~ Exp(1):
    # one full-tile log + one (EUP, ~free) approx reciprocal; only the per-row
    # tile winner is converted back to the log domain for the cross-tile race.
    bits = _hash_u32(row, col, seed_ref[0])
    e = -jnp.log(_uniform_from_bits(bits))
    key = p * pl.reciprocal(e, approx=True)
    tile_key = jnp.max(key, axis=1, keepdims=True)                # (tm, 1)
    tile_idx = jnp.max(jnp.where(key >= tile_key, col, -1),
                       axis=1, keepdims=True)                     # argmax within the tile
    tile_best = new_m + jnp.log(tile_key)                         # perturbed logit, log domain
    better = tile_best > g_max[...]
    g_idx[...] = jnp.where(better, tile_idx, g_idx[...])
    g_max[...] = jnp.maximum(g_max[...], tile_best)

    # --- finalize on the last vocab tile ---
    @pl.when(j == nv - 1)
    def _fin():
        lse = m_run[...] + jnp.log(l_run[...])
        gt_ref[...] = gt_acc[...] - lse
        # recover the logit at the Gumbel winner by re-hashing its noise
        # (replaces the former second full-tile gather pass)
        u_w = _uniform_from_bits(_hash_u32(row, g_idx[...], seed_ref[0]))   # (tm, 1)
        samp_logit = g_max[...] + jnp.log(-jnp.log(u_w))          # = pert_winner - gumbel_winner
        sp_ref[...] = samp_logit - lse
        idx_ref[...] = g_idx[...]


# ---------------------------------------------------------------------------------
# Tiling / chip configuration helpers
# ---------------------------------------------------------------------------------
def _pick_tile(dim, preferred, quantum, base):
    """Largest tile <= preferred dividing dim, on `quantum` (falls back to `base`)."""
    if preferred < quantum:
        quantum = base
    for q in (quantum, base):
        if dim % q:
            continue
        t = max(q, min(preferred, dim) // q * q)
        while dim % t:
            t -= q
        return t
    raise ValueError(f"dim {dim} is not a multiple of {base}")


def _device_config(hidden):
    """Chip-aware tile / VMEM defaults.

    v5e/v6e (128 MiB VMEM): raise tm to amortize the (H,V) weight HBM stream.
    v7x (64 MiB VMEM, 3.2 TB/s HBM): keep tm=256, shrink tv for large H, 40 MiB budget.
    tv quantum 256 on v6e/v7x (MXU output width), 128 on v5e.
    """
    try:
        kind = jax.devices()[0].device_kind.lower()
    except Exception:
        kind = ""
    if "v7" in kind:
        return dict(tm=256, tv=1024 if hidden >= 2048 else 2048, tv_quantum=256,
                    vmem_limit_bytes=40 * 1024 * 1024)
    if "v6" in kind:
        return dict(tm=512, tv=2048, tv_quantum=256, vmem_limit_bytes=96 * 1024 * 1024)
    if "v5 lite" in kind or "v5lite" in kind or "v5e" in kind:
        return dict(tm=1024, tv=2048, tv_quantum=128, vmem_limit_bytes=96 * 1024 * 1024)
    return dict(tm=256, tv=2048, tv_quantum=128, vmem_limit_bytes=48 * 1024 * 1024)


def fused_decoder_sample(seed, h, w, b, tgt, *, tm, tv, tv_quantum=128,
                         vmem_limit_bytes=48 * 1024 * 1024):
    """Returns per-row (M, 1): log p(target), log p(sampled), sampled token id."""
    M, H = h.shape
    V = w.shape[1]
    tm = _pick_tile(M, tm, 8, 8)
    tv = _pick_tile(V, tv, tv_quantum, 128)
    # NOTE: on v7x, keeping M/tm even lets both TensorCores get equal row-tile counts.
    grid = (M // tm, V // tv)

    grid_spec = pltpu.PrefetchScalarGridSpec(
        num_scalar_prefetch=1,
        grid=grid,
        in_specs=[
            pl.BlockSpec((tm, H), lambda i, j, seed_ref: (i, 0)),   # hidden states (bf16)
            pl.BlockSpec((H, tv), lambda i, j, seed_ref: (0, j)),   # projection weights (bf16)
            pl.BlockSpec((1, tv), lambda i, j, seed_ref: (0, j)),   # bias (f32)
            pl.BlockSpec((tm, 1), lambda i, j, seed_ref: (i, 0)),   # gt target ids
        ],
        out_specs=[
            pl.BlockSpec((tm, 1), lambda i, j, seed_ref: (i, 0)),
            pl.BlockSpec((tm, 1), lambda i, j, seed_ref: (i, 0)),
            pl.BlockSpec((tm, 1), lambda i, j, seed_ref: (i, 0)),
        ],
        scratch_shapes=[
            pltpu.VMEM((tm, 1), jnp.float32),   # m_run   (running softmax max)
            pltpu.VMEM((tm, 1), jnp.float32),   # l_run   (running sum-exp)
            pltpu.VMEM((tm, 1), jnp.float32),   # gt_acc  (logit at gt target)
            pltpu.VMEM((tm, 1), jnp.float32),   # g_max   (best perturbed logit, log domain)
            pltpu.VMEM((tm, 1), jnp.int32),     # g_idx   (Gumbel-argmax token id)
        ],
    )
    return pl.pallas_call(
        _fused_decoder_sampler_kernel,
        grid_spec=grid_spec,
        out_shape=(
            jax.ShapeDtypeStruct((M, 1), jnp.float32),
            jax.ShapeDtypeStruct((M, 1), jnp.float32),
            jax.ShapeDtypeStruct((M, 1), jnp.int32),
        ),
        compiler_params=pltpu.CompilerParams(
            dimension_semantics=("parallel", "arbitrary"),
            vmem_limit_bytes=vmem_limit_bytes),
    )(seed, h, w, b, tgt)


def _pad_rows(x, mult, value=0):
    pad = (-x.shape[0]) % mult
    if pad:
        widths = [(0, pad)] + [(0, 0)] * (x.ndim - 1)
        x = jnp.pad(x, widths, constant_values=value)
    return x


def _pad_cols(x, mult, value=0):
    pad = (-x.shape[-1]) % mult
    if pad:
        widths = [(0, 0)] * (x.ndim - 1) + [(0, pad)]
        x = jnp.pad(x, widths, constant_values=value)
    return x


# ---------------------------------------------------------------------------------
# Epilogue (plain jnp): both masked NLLs + log-space importance weights.
# Operates on tiny (B, T) per-token arrays; a dedicated pallas_call here was pure
# launch overhead (perf review), so XLA handles these reductions.
# ---------------------------------------------------------------------------------
def loss_epilogue(gt_logp, samp_logp, sampled, target, mask):
    mask = mask.astype(jnp.float32)
    den = jnp.maximum(jnp.sum(mask), 1.0)

    # ground-truth masked NLL (get_ml_loss with scores=None)
    loss_gt = -jnp.sum(gt_logp * mask) / den

    # q, reward, importance — all in log space (no exp(sum logp) underflow)
    log_q = jnp.sum(samp_logp * mask, axis=1)                       # (B,)
    mism = (sampled != target).astype(jnp.float32)
    valid = jnp.maximum(jnp.sum(mask, axis=1), 1.0)
    log_r = -jnp.sum(mism * mask, axis=1) / valid                   # r = exp(-smoothed hamming)
    log_imp = log_r - log_q

    # importance / mean(importance) via a logsumexp-normalized softmax
    imp_norm = jax.nn.softmax(log_imp) * log_imp.shape[0]           # (B,)

    # sampled-label masked NLL weighted by the normalized importance (lazy_rnn path)
    mc_output = -jnp.sum(samp_logp * mask * imp_norm[:, None]) / den
    return loss_gt, mc_output, imp_norm


# ---------------------------------------------------------------------------------
# ImportanceSampler forward (JAX/Pallas re-implementation, MC == 1, lazy_rnn)
# ---------------------------------------------------------------------------------
class ImportanceSamplerPallas:
    def __init__(self, mc_samples=1, lazy_rnn=True, tm=None, tv=None,
                 tv_quantum=None, vmem_limit_bytes=None):
        assert mc_samples == 1     # MC == 1 branch of the reference forward
        assert lazy_rnn            # lazy_rnn path (sampled loss evaluated on the gt logits)
        self.mc_samples = mc_samples
        self.lazy_rnn = lazy_rnn
        self.tm = tm
        self.tv = tv
        self.tv_quantum = tv_quantum
        self.vmem_limit_bytes = vmem_limit_bytes
        # TODO(synk): combine_loss=True (WordSmoothCriterion) branch not implemented.

    def forward(self, params, src_emb, src_code, state, input_lines_trg,
                trg_lengths, output_lines_trg, mask, scores=None, seed=42):
        # glue: embedding lookup + source context (model.forward_decoder prologue)
        emb = jnp.take(params["emb"], input_lines_trg, axis=0) + src_code[:, None, :]
        B, T, H = emb.shape
        V = params["w_out"].shape[1]
        target = output_lines_trg[:, :T].astype(jnp.int32)
        mask = mask[:, :T].astype(jnp.float32)
        if scores is not None:
            mask = mask * jnp.tile(scores, (1, T))       # "scaling the masks"

        cfg = _device_config(H)
        tm = self.tm if self.tm is not None else cfg["tm"]
        tv = self.tv if self.tv is not None else cfg["tv"]
        tvq = self.tv_quantum if self.tv_quantum is not None else cfg["tv_quantum"]
        vmem = (self.vmem_limit_bytes if self.vmem_limit_bytes is not None
                else cfg["vmem_limit_bytes"])

        # fused decoder projection + log_softmax + Gumbel-max sampling + token gathers
        M = B * T
        h = emb.reshape(M, H).astype(jnp.bfloat16)        # bf16 MXU inputs
        w = params["w_out"].astype(jnp.bfloat16)          # TODO(synk): optional fp8 weights on v7x
        bias = params["b_out"].reshape(1, V).astype(jnp.float32)
        tgt_col = jnp.clip(target, 0, V - 1).reshape(M, 1)  # keep pad ids inside [0, V)

        # pad rows / vocab to tile quanta (padded vocab gets a -1e9 bias: never sampled,
        # contributes ~0 to the softmax sum)
        h_p = _pad_rows(h, 8)
        tgt_p = _pad_rows(tgt_col, 8)
        w_p = _pad_cols(w, 128)
        bias_p = _pad_cols(bias, 128, value=-1e9)

        seed_arr = jnp.array([seed], dtype=jnp.int32)
        gt_logp, samp_logp, sampled = fused_decoder_sample(
            seed_arr, h_p, w_p, bias_p, tgt_p,
            tm=tm, tv=tv, tv_quantum=tvq, vmem_limit_bytes=vmem)
        gt_logp = gt_logp[:M].reshape(B, T)
        samp_logp = samp_logp[:M].reshape(B, T)
        sampled = sampled[:M].reshape(B, T)

        # epilogue: loss_gt, importance-weighted mc loss, normalized importance
        loss_gt, mc_output, imp_norm = loss_epilogue(
            gt_logp, samp_logp, sampled, target, mask)

        stats = {
            "importance_mean": jnp.mean(imp_norm),
            "importance_std": jnp.std(imp_norm),
        }
        # TODO(synk): non-lazy batch_loss (re-running the decoder on the sampled inputs),
        # MC > 1 averaging and BLEU/CIDEr rewards not implemented; the reward is a
        # smoothed-hamming stand-in for scorer.get_scores.
        return loss_gt, mc_output, stats


# ---------------------------------------------------------------------------------
if __name__ == "__main__":
    B, T, S, H, V = 4, 8, 6, 64, 512
    key = jax.random.PRNGKey(0)
    ks = jax.random.split(key, 6)

    # deterministic synthetic "model" parameters
    params = {
        "emb": jax.random.normal(ks[0], (V, H), jnp.float32) * 0.1,
        "w_out": jax.random.normal(ks[1], (H, V), jnp.float32) * 0.1,
        "b_out": jnp.zeros((1, V), jnp.float32),
    }

    # inputs consistent with the forward signature
    src_emb = jax.random.normal(ks[2], (B, S, H), jnp.float32)
    src_code = jnp.mean(src_emb, axis=1)                                   # (B, H)
    input_lines_trg = jax.random.randint(ks[3], (B, T), 0, V, jnp.int32)
    output_lines_trg = jax.random.randint(ks[4], (B, T), 0, V, jnp.int32)
    trg_lengths = jax.random.randint(ks[5], (B,), T // 2, T + 1, jnp.int32)
    mask = (jnp.arange(T)[None, :] < trg_lengths[:, None]).astype(jnp.float32)
    state = None

    # small tiles so the toy shapes still exercise the (rows, vocab) grid: grid = (2, 4)
    sampler = ImportanceSamplerPallas(mc_samples=1, lazy_rnn=True, tm=16, tv=128)
    loss_gt, output, stats = sampler.forward(
        params, src_emb, src_code, state, input_lines_trg,
        trg_lengths, output_lines_trg, mask, scores=None, seed=42)

    jax.block_until_ready((loss_gt, output,
                           stats["importance_mean"], stats["importance_std"]))
    assert bool(jnp.isfinite(loss_gt)) and bool(jnp.isfinite(output))
    print("KERNEL_OK")
</pallas_src>

<mosaic_0001>
module attributes {stable_mosaic.version = 11 : i64} {
  func.func @_fused_decoder_sampler_kernel(%arg0: i32, %arg1: i32, %arg2: memref<1xi32, #tpu.memory_space<smem>>, %arg3: memref<16x64xbf16, #tpu.memory_space<vmem>>, %arg4: memref<64x128xbf16, #tpu.memory_space<vmem>>, %arg5: memref<1x128xf32, #tpu.memory_space<vmem>>, %arg6: memref<16x1xi32, #tpu.memory_space<vmem>>, %arg7: memref<16x1xf32, #tpu.memory_space<vmem>>, %arg8: memref<16x1xf32, #tpu.memory_space<vmem>>, %arg9: memref<16x1xi32, #tpu.memory_space<vmem>>, %arg10: memref<16x1xf32, #tpu.memory_space<vmem>>, %arg11: memref<16x1xf32, #tpu.memory_space<vmem>>, %arg12: memref<16x1xf32, #tpu.memory_space<vmem>>, %arg13: memref<16x1xf32, #tpu.memory_space<vmem>>, %arg14: memref<16x1xi32, #tpu.memory_space<vmem>>) attributes {dimension_semantics = [#tpu.dimension_semantics<parallel>, #tpu.dimension_semantics<arbitrary>], iteration_bounds = array<i64: 2, 4>, scalar_prefetch = 1 : i64, scratch_operands = 5 : i64, tpu.core_type = #tpu.core_type<tc>, window_params = [{transform_indices = @transform_0, window_bounds = array<i64: 16, 64>}, {transform_indices = @transform_1, window_bounds = array<i64: 64, 128>}, {transform_indices = @transform_2, window_bounds = array<i64: 1, 128>}, {transform_indices = @transform_3, window_bounds = array<i64: 16, 1>}, {transform_indices = @transform_4, window_bounds = array<i64: 16, 1>}, {transform_indices = @transform_5, window_bounds = array<i64: 16, 1>}, {transform_indices = @transform_6, window_bounds = array<i64: 16, 1>}]} {
    %c0_i32 = arith.constant 0 : i32
    %0 = arith.cmpi eq, %arg1, %c0_i32 : i32
    %1 = arith.extui %0 : i1 to i32
    %c0_i32_0 = arith.constant 0 : i32
    %2 = arith.cmpi ne, %1, %c0_i32_0 : i32
    scf.if %2 {
      %cst_44 = arith.constant 0xFF800000 : f32
      %105 = vector.broadcast %cst_44 : f32 to vector<16x1xf32>
      %c0_45 = arith.constant 0 : index
      %c0_46 = arith.constant 0 : index
      %106 = vector.load %arg10[%c0_45, %c0_46] : memref<16x1xf32, #tpu.memory_space<vmem>>, vector<16x1xf32>
      tpu.vector_store %arg10[%c0_45, %c0_46], %105 {strides = array<i32>} : memref<16x1xf32, #tpu.memory_space<vmem>>, vector<16x1xf32>,
      %cst_47 = arith.constant 0.000000e+00 : f32
      %107 = vector.broadcast %cst_47 : f32 to vector<16x1xf32>
      %c0_48 = arith.constant 0 : index
      %c0_49 = arith.constant 0 : index
      %108 = vector.load %arg11[%c0_48, %c0_49] : memref<16x1xf32, #tpu.memory_space<vmem>>, vector<16x1xf32>
      tpu.vector_store %arg11[%c0_48, %c0_49], %107 {strides = array<i32>} : memref<16x1xf32, #tpu.memory_space<vmem>>, vector<16x1xf32>,
      %cst_50 = arith.constant 0.000000e+00 : f32
      %109 = vector.broadcast %cst_50 : f32 to vector<16x1xf32>
      %c0_51 = arith.constant 0 : index
      %c0_52 = arith.constant 0 : index
      %110 = vector.load %arg12[%c0_51, %c0_52] : memref<16x1xf32, #tpu.memory_space<vmem>>, vector<16x1xf32>
      tpu.vector_store %arg12[%c0_51, %c0_52], %109 {strides = array<i32>} : memref<16x1xf32, #tpu.memory_space<vmem>>, vector<16x1xf32>,
      %cst_53 = arith.constant 0xFF800000 : f32
      %111 = vector.broadcast %cst_53 : f32 to vector<16x1xf32>
      %c0_54 = arith.constant 0 : index
      %c0_55 = arith.constant 0 : index
      %112 = vector.load %arg13[%c0_54, %c0_55] : memref<16x1xf32, #tpu.memory_space<vmem>>, vector<16x1xf32>
      tpu.vector_store %arg13[%c0_54, %c0_55], %111 {strides = array<i32>} : memref<16x1xf32, #tpu.memory_space<vmem>>, vector<16x1xf32>,
      %c0_i32_56 = arith.constant 0 : i32
      %113 = vector.broadcast %c0_i32_56 : i32 to vector<16x1xi32>
      %c0_57 = arith.constant 0 : index
      %c0_58 = arith.constant 0 : index
      %114 = vector.load %arg14[%c0_57, %c0_58] : memref<16x1xi32, #tpu.memory_space<vmem>>, vector<16x1xi32>
      tpu.vector_store %arg14[%c0_57, %c0_58], %113 {strides = array<i32>} : memref<16x1xi32, #tpu.memory_space<vmem>>, vector<16x1xi32>,
    } else {
    }
    %c0 = arith.constant 0 : index
    %c0_1 = arith.constant 0 : index
    %3 = vector.load %arg3[%c0, %c0_1] : memref<16x64xbf16, #tpu.memory_space<vmem>>, vector<16x64xbf16>
    %c0_2 = arith.constant 0 : index
    %c0_3 = arith.constant 0 : index
    %4 = vector.load %arg4[%c0_2, %c0_3] : memref<64x128xbf16, #tpu.memory_space<vmem>>, vector<64x128xbf16>
    %cst = arith.constant dense<0.000000e+00> : vector<16x128xf32>
    %5 = tpu.matmul %3, %4, %cst {dimension_numbers = #tpu.dot_dimension_numbers<[1], [0], [0], [1], [0, 0, 1, 1], [], []>} : vector<16x64xbf16>, vector<64x128xbf16>, vector<16x128xf32> -> vector<16x128xf32>
    %c0_4 = arith.constant 0 : index
    %c0_5 = arith.constant 0 : index
    %6 = vector.load %arg5[%c0_4, %c0_5] : memref<1x128xf32, #tpu.memory_space<vmem>>, vector<1x128xf32>
    %7 = vector.broadcast %6 : vector<1x128xf32> to vector<16x128xf32>
    %8 = arith.addf %5, %7 : vector<16x128xf32>
    %9 = tpu.iota {dimensions = array<i32: 1>} : vector<1x128xi32>
    %c128_i32 = arith.constant 128 : i32
    %10 = arith.muli %arg1, %c128_i32 : i32
    %11 = vector.broadcast %10 : i32 to vector<1x128xi32>
    %12 = arith.addi %9, %11 : vector<1x128xi32>
    %13 = tpu.iota {dimensions = array<i32: 0>} : vector<16x1xi32>
    %c16_i32 = arith.constant 16 : i32
    %14 = arith.muli %arg0, %c16_i32 : i32
    %15 = vector.broadcast %14 : i32 to vector<16x1xi32>
    %16 = arith.addi %13, %15 : vector<16x1xi32>
    %c0_6 = arith.constant 0 : index
    %c0_7 = arith.constant 0 : index
    %17 = vector.load %arg12[%c0_6, %c0_7] : memref<16x1xf32, #tpu.memory_space<vmem>>, vector<16x1xf32>
    %c0_8 = arith.constant 0 : index
    %c0_9 = arith.constant 0 : index
    %18 = vector.load %arg6[%c0_8, %c0_9] : memref<16x1xi32, #tpu.memory_space<vmem>>, vector<16x1xi32>
    %19 = vector.broadcast %12 : vector<1x128xi32> to vector<16x128xi32>
    %20 = vector.broadcast %18 : vector<16x1xi32> to vector<16x128xi32>
    %21 = arith.cmpi eq, %19, %20 : vector<16x128xi32>
    %cst_10 = arith.constant 0.000000e+00 : f32
    %22 = vector.broadcast %cst_10 : f32 to vector<16x128xf32>
    %23 = arith.select %21, %8, %22 : vector<16x128xi1>, vector<16x128xf32>
    %cst_11 = arith.constant dense<0.000000e+00> : vector<16xf32>
    %24 = vector.multi_reduction <add>, %23, %cst_11 [1] : vector<16x128xf32> to vector<16xf32>
    %25 = vector.shape_cast %24 : vector<16xf32> to vector<16x1xf32>
    %26 = arith.addf %17, %25 : vector<16x1xf32>
    %c0_12 = arith.constant 0 : index
    %c0_13 = arith.constant 0 : index
    %27 = vector.load %arg12[%c0_12, %c0_13] : memref<16x1xf32, #tpu.memory_space<vmem>>, vector<16x1xf32>
    tpu.vector_store %arg12[%c0_12, %c0_13], %26 {strides = array<i32>} : memref<16x1xf32, #tpu.memory_space<vmem>>, vector<16x1xf32>,
    %cst_14 = arith.constant dense<0xFF800000> : vector<16xf32>
    %28 = vector.multi_reduction <maximumf>, %8, %cst_14 [1] : vector<16x128xf32> to vector<16xf32>
    %29 = vector.shape_cast %28 : vector<16xf32> to vector<16x1xf32>
    %c0_15 = arith.constant 0 : index
    %c0_16 = arith.constant 0 : index
    %30 = vector.load %arg10[%c0_15, %c0_16] : memref<16x1xf32, #tpu.memory_space<vmem>>, vector<16x1xf32>
    %31 = arith.maximumf %30, %29 : vector<16x1xf32>
    %32 = vector.broadcast %31 : vector<16x1xf32> to vector<16x128xf32>
    %33 = arith.subf %8, %32 : vector<16x128xf32>
    %34 = math.exp %33 : vector<16x128xf32>
    %c0_17 = arith.constant 0 : index
    %c0_18 = arith.constant 0 : index
    %35 = vector.load %arg11[%c0_17, %c0_18] : memref<16x1xf32, #tpu.memory_space<vmem>>, vector<16x1xf32>
    %c0_19 = arith.constant 0 : index
    %c0_20 = arith.constant 0 : index
    %36 = vector.load %arg10[%c0_19, %c0_20] : memref<16x1xf32, #tpu.memory_space<vmem>>, vector<16x1xf32>
    %37 = arith.subf %36, %31 : vector<16x1xf32>
    %38 = math.exp %37 : vector<16x1xf32>
    %39 = arith.mulf %35, %38 : vector<16x1xf32>
    %cst_21 = arith.constant dense<0.000000e+00> : vector<16xf32>
    %40 = vector.multi_reduction <add>, %34, %cst_21 [1] : vector<16x128xf32> to vector<16xf32>
    %41 = vector.shape_cast %40 : vector<16xf32> to vector<16x1xf32>
    %42 = arith.addf %39, %41 : vector<16x1xf32>
    %c0_22 = arith.constant 0 : index
    %c0_23 = arith.constant 0 : index
    %43 = vector.load %arg11[%c0_22, %c0_23] : memref<16x1xf32, #tpu.memory_space<vmem>>, vector<16x1xf32>
    tpu.vector_store %arg11[%c0_22, %c0_23], %42 {strides = array<i32>} : memref<16x1xf32, #tpu.memory_space<vmem>>, vector<16x1xf32>,
    %c0_24 = arith.constant 0 : index
    %c0_25 = arith.constant 0 : index
    %44 = vector.load %arg10[%c0_24, %c0_25] : memref<16x1xf32, #tpu.memory_space<vmem>>, vector<16x1xf32>
    tpu.vector_store %arg10[%c0_24, %c0_25], %31 {strides = array<i32>} : memref<16x1xf32, #tpu.memory_space<vmem>>, vector<16x1xf32>,
    %c0_26 = arith.constant 0 : index
    %45 = memref.load %arg2[%c0_26] : memref<1xi32, #tpu.memory_space<smem>>
    %c-1028477379_i32 = arith.constant -1028477379 : i32
    %46 = arith.muli %45, %c-1028477379_i32 : i32
    %c668265263_i32 = arith.constant 668265263 : i32
    %47 = arith.addi %46, %c668265263_i32 : i32
    %c-2048144777_i32 = arith.constant -2048144777 : i32
    %48 = vector.broadcast %c-2048144777_i32 : i32 to vector<1x128xi32>
    %49 = arith.muli %12, %48 : vector<1x128xi32>
    %50 = vector.broadcast %47 : i32 to vector<1x128xi32>
    %51 = arith.xori %49, %50 : vector<1x128xi32>
    %c-1640531535_i32 = arith.constant -1640531535 : i32
    %52 = vector.broadcast %c-1640531535_i32 : i32 to vector<16x1xi32>
    %53 = arith.muli %16, %52 : vector<16x1xi32>
    %54 = vector.broadcast %53 : vector<16x1xi32> to vector<16x128xi32>
    %55 = vector.broadcast %51 : vector<1x128xi32> to vector<16x128xi32>
    %56 = arith.xori %54, %55 : vector<16x128xi32>
    %c16_i32_27 = arith.constant 16 : i32
    %57 = vector.broadcast %c16_i32_27 : i32 to vector<16x128xi32>
    %58 = arith.shrui %56, %57 : vector<16x128xi32>
    %59 = arith.xori %56, %58 : vector<16x128xi32>
    %c2146121005_i32 = arith.constant 2146121005 : i32
    %60 = vector.broadcast %c2146121005_i32 : i32 to vector<16x128xi32>
    %61 = arith.muli %59, %60 : vector<16x128xi32>
    %c15_i32 = arith.constant 15 : i32
    %62 = vector.broadcast %c15_i32 : i32 to vector<16x128xi32>
    %63 = arith.shrui %61, %62 : vector<16x128xi32>
    %64 = arith.xori %61, %63 : vector<16x128xi32>
    %c-2073254261_i32 = arith.constant -2073254261 : i32
    %65 = vector.broadcast %c-2073254261_i32 : i32 to vector<16x128xi32>
    %66 = arith.muli %64, %65 : vector<16x128xi32>
    %c16_i32_28 = arith.constant 16 : i32
    %67 = vector.broadcast %c16_i32_28 : i32 to vector<16x128xi32>
    %68 = arith.shrui %66, %67 : vector<16x128xi32>
    %69 = arith.xori %66, %68 : vector<16x128xi32>
    %c9_i32 = arith.constant 9 : i32
    %70 = vector.broadcast %c9_i32 : i32 to vector<16x128xi32>
    %71 = arith.shrui %69, %70 : vector<16x128xi32>
    %c1065353217_i32 = arith.constant 1065353217 : i32
    %72 = vector.broadcast %c1065353217_i32 : i32 to vector<16x128xi32>
    %73 = arith.ori %71, %72 : vector<16x128xi32>
    %74 = tpu.bitcast %73 : vector<16x128xi32> -> vector<16x128xf32>
    %cst_29 = arith.constant 1.000000e+00 : f32
    %75 = vector.broadcast %cst_29 : f32 to vector<16x128xf32>
    %76 = arith.subf %74, %75 : vector<16x128xf32>
    %77 = math.log %76 : vector<16x128xf32>
    %cst_30 = arith.constant 0.000000e+00 : f32
    %78 = vector.broadcast %cst_30 : f32 to vector<16x128xf32>
    %79 = arith.subf %78, %77 : vector<16x128xf32>
    %80 = tpu.reciprocal %79 {approx = true} : vector<16x128xf32> -> vector<16x128xf32>
    %81 = arith.mulf %34, %80 : vector<16x128xf32>
    %cst_31 = arith.constant dense<0xFF800000> : vector<16xf32>
    %82 = vector.multi_reduction <maximumf>, %81, %cst_31 [1] : vector<16x128xf32> to vector<16xf32>
    %83 = vector.shape_cast %82 : vector<16xf32> to vector<16x1xf32>
    %84 = vector.broadcast %83 : vector<16x1xf32> to vector<16x128xf32>
    %85 = arith.cmpf oge, %81, %84 : vector<16x128xf32>
    %c-1_i32 = arith.constant -1 : i32
    %86 = vector.shape_cast %12 : vector<1x128xi32> to vector<1x128xi32>
    %87 = vector.broadcast %86 : vector<1x128xi32> to vector<16x128xi32>
    %88 = vector.broadcast %c-1_i32 : i32 to vector<16x128xi32>
    %89 = arith.select %85, %87, %88 : vector<16x128xi1>, vector<16x128xi32>
    %cst_32 = arith.constant dense<-2147483648> : vector<16xi32>
    %90 = vector.multi_reduction <maxsi>, %89, %cst_32 [1] : vector<16x128xi32> to vector<16xi32>
    %91 = vector.shape_cast %90 : vector<16xi32> to vector<16x1xi32>
    %92 = math.log %83 : vector<16x1xf32>
    %93 = arith.addf %31, %92 : vector<16x1xf32>
    %c0_33 = arith.constant 0 : index
    %c0_34 = arith.constant 0 : index
    %94 = vector.load %arg13[%c0_33, %c0_34] : memref<16x1xf32, #tpu.memory_space<vmem>>, vector<16x1xf32>
    %95 = arith.cmpf ogt, %93, %94 : vector<16x1xf32>
    %c0_35 = arith.constant 0 : index
    %c0_36 = arith.constant 0 : index
    %96 = vector.load %arg14[%c0_35, %c0_36] : memref<16x1xi32, #tpu.memory_space<vmem>>, vector<16x1xi32>
    %97 = arith.select %95, %91, %96 : vector<16x1xi1>, vector<16x1xi32>
    %c0_37 = arith.constant 0 : index
    %c0_38 = arith.constant 0 : index
    %98 = vector.load %arg14[%c0_37, %c0_38] : memref<16x1xi32, #tpu.memory_space<vmem>>, vector<16x1xi32>
    tpu.vector_store %arg14[%c0_37, %c0_38], %97 {strides = array<i32>} : memref<16x1xi32, #tpu.memory_space<vmem>>, vector<16x1xi32>,
    %c0_39 = arith.constant 0 : index
    %c0_40 = arith.constant 0 : index
    %99 = vector.load %arg13[%c0_39, %c0_40] : memref<16x1xf32, #tpu.memory_space<vmem>>, vector<16x1xf32>
    %100 = arith.maximumf %99, %93 : vector<16x1xf32>
    %c0_41 = arith.constant 0 : index
    %c0_42 = arith.constant 0 : index
    %101 = vector.load %arg13[%c0_41, %c0_42] : memref<16x1xf32, #tpu.memory_space<vmem>>, vector<16x1xf32>
    tpu.vector_store %arg13[%c0_41, %c0_42], %100 {strides = array<i32>} : memref<16x1xf32, #tpu.memory_space<vmem>>, vector<16x1xf32>,
    %c3_i32 = arith.constant 3 : i32
    %102 = arith.cmpi eq, %arg1, %c3_i32 : i32
    %103 = arith.extui %102 : i1 to i32
    %c0_i32_43 = arith.constant 0 : i32
    %104 = arith.cmpi ne, %103, %c0_i32_43 : i32
    scf.if %104 {
      %c0_44 = arith.constant 0 : index
      %c0_45 = arith.constant 0 : index
      %105 = vector.load %arg10[%c0_44, %c0_45] : memref<16x1xf32, #tpu.memory_space<vmem>>, vector<16x1xf32>
      %c0_46 = arith.constant 0 : index
      %c0_47 = arith.constant 0 : index
      %106 = vector.load %arg11[%c0_46, %c0_47] : memref<16x1xf32, #tpu.memory_space<vmem>>, vector<16x1xf32>
      %107 = math.log %106 : vector<16x1xf32>
      %108 = arith.addf %105, %107 : vector<16x1xf32>
      %c0_48 = arith.constant 0 : index
      %c0_49 = arith.constant 0 : index
      %109 = vector.load %arg12[%c0_48, %c0_49] : memref<16x1xf32, #tpu.memory_space<vmem>>, vector<16x1xf32>
      %110 = arith.subf %109, %108 : vector<16x1xf32>
      %c0_50 = arith.constant 0 : index
      %c0_51 = arith.constant 0 : index
      %111 = vector.load %arg7[%c0_50, %c0_51] : memref<16x1xf32, #tpu.memory_space<vmem>>, vector<16x1xf32>
      tpu.vector_store %arg7[%c0_50, %c0_51], %110 {strides = array<i32>} : memref<16x1xf32, #tpu.memory_space<vmem>>, vector<16x1xf32>,
      %c0_52 = arith.constant 0 : index
      %c0_53 = arith.constant 0 : index
      %112 = vector.load %arg14[%c0_52, %c0_53] : memref<16x1xi32, #tpu.memory_space<vmem>>, vector<16x1xi32>
      %c0_54 = arith.constant 0 : index
      %113 = memref.load %arg2[%c0_54] : memref<1xi32, #tpu.memory_space<smem>>
      %c-1028477379_i32_55 = arith.constant -1028477379 : i32
      %114 = arith.muli %113, %c-1028477379_i32_55 : i32
      %c668265263_i32_56 = arith.constant 668265263 : i32
      %115 = arith.addi %114, %c668265263_i32_56 : i32
      %c-2048144777_i32_57 = arith.constant -2048144777 : i32
      %116 = vector.broadcast %c-2048144777_i32_57 : i32 to vector<16x1xi32>
      %117 = arith.muli %112, %116 : vector<16x1xi32>
      %118 = vector.broadcast %115 : i32 to vector<16x1xi32>
      %119 = arith.xori %117, %118 : vector<16x1xi32>
      %c-1640531535_i32_58 = arith.constant -1640531535 : i32
      %120 = vector.broadcast %c-1640531535_i32_58 : i32 to vector<16x1xi32>
      %121 = arith.muli %16, %120 : vector<16x1xi32>
      %122 = arith.xori %121, %119 : vector<16x1xi32>
      %c16_i32_59 = arith.constant 16 : i32
      %123 = vector.broadcast %c16_i32_59 : i32 to vector<16x1xi32>
      %124 = arith.shrui %122, %123 : vector<16x1xi32>
      %125 = arith.xori %122, %124 : vector<16x1xi32>
      %c2146121005_i32_60 = arith.constant 2146121005 : i32
      %126 = vector.broadcast %c2146121005_i32_60 : i32 to vector<16x1xi32>
      %127 = arith.muli %125, %126 : vector<16x1xi32>
      %c15_i32_61 = arith.constant 15 : i32
      %128 = vector.broadcast %c15_i32_61 : i32 to vector<16x1xi32>
      %129 = arith.shrui %127, %128 : vector<16x1xi32>
      %130 = arith.xori %127, %129 : vector<16x1xi32>
      %c-2073254261_i32_62 = arith.constant -2073254261 : i32
      %131 = vector.broadcast %c-2073254261_i32_62 : i32 to vector<16x1xi32>
      %132 = arith.muli %130, %131 : vector<16x1xi32>
      %c16_i32_63 = arith.constant 16 : i32
      %133 = vector.broadcast %c16_i32_63 : i32 to vector<16x1xi32>
      %134 = arith.shrui %132, %133 : vector<16x1xi32>
      %135 = arith.xori %132, %134 : vector<16x1xi32>
      %c9_i32_64 = arith.constant 9 : i32
      %136 = vector.broadcast %c9_i32_64 : i32 to vector<16x1xi32>
      %137 = arith.shrui %135, %136 : vector<16x1xi32>
      %c1065353217_i32_65 = arith.constant 1065353217 : i32
      %138 = vector.broadcast %c1065353217_i32_65 : i32 to vector<16x1xi32>
      %139 = arith.ori %137, %138 : vector<16x1xi32>
      %140 = tpu.bitcast %139 : vector<16x1xi32> -> vector<16x1xf32>
      %cst_66 = arith.constant 1.000000e+00 : f32
      %141 = vector.broadcast %cst_66 : f32 to vector<16x1xf32>
      %142 = arith.subf %140, %141 : vector<16x1xf32>
      %c0_67 = arith.constant 0 : index
      %c0_68 = arith.constant 0 : index
      %143 = vector.load %arg13[%c0_67, %c0_68] : memref<16x1xf32, #tpu.memory_space<vmem>>, vector<16x1xf32>
      %144 = math.log %142 : vector<16x1xf32>
      %cst_69 = arith.constant 0.000000e+00 : f32
      %145 = vector.broadcast %cst_69 : f32 to vector<16x1xf32>
      %146 = arith.subf %145, %144 : vector<16x1xf32>
      %147 = math.log %146 : vector<16x1xf32>
      %148 = arith.addf %143, %147 : vector<16x1xf32>
      %149 = arith.subf %148, %108 : vector<16x1xf32>
      %c0_70 = arith.constant 0 : index
      %c0_71 = arith.constant 0 : index
      %150 = vector.load %arg8[%c0_70, %c0_71] : memref<16x1xf32, #tpu.memory_space<vmem>>, vector<16x1xf32>
      tpu.vector_store %arg8[%c0_70, %c0_71], %149 {strides = array<i32>} : memref<16x1xf32, #tpu.memory_space<vmem>>, vector<16x1xf32>,
      %c0_72 = arith.constant 0 : index
      %c0_73 = arith.constant 0 : index
      %151 = vector.load %arg14[%c0_72, %c0_73] : memref<16x1xi32, #tpu.memory_space<vmem>>, vector<16x1xi32>
      %c0_74 = arith.constant 0 : index
      %c0_75 = arith.constant 0 : index
      %152 = vector.load %arg9[%c0_74, %c0_75] : memref<16x1xi32, #tpu.memory_space<vmem>>, vector<16x1xi32>
      tpu.vector_store %arg9[%c0_74, %c0_75], %151 {strides = array<i32>} : memref<16x1xi32, #tpu.memory_space<vmem>>, vector<16x1xi32>,
    } else {
    }
    return
  }
  func.func @transform_0(%arg0: i32, %arg1: i32, %arg2: memref<1xi32, #tpu.memory_space<smem>>) -> (i32, i32) {
    %c0_i32 = arith.constant 0 : i32
    %c0_i32_0 = arith.constant 0 : i32
    return %arg0, %c0_i32 : i32, i32
  }
  func.func @transform_1(%arg0: i32, %arg1: i32, %arg2: memref<1xi32, #tpu.memory_space<smem>>) -> (i32, i32) {
    %c0_i32 = arith.constant 0 : i32
    %c0_i32_0 = arith.constant 0 : i32
    return %c0_i32, %arg1 : i32, i32
  }
  func.func @transform_2(%arg0: i32, %arg1: i32, %arg2: memref<1xi32, #tpu.memory_space<smem>>) -> (i32, i32) {
    %c0_i32 = arith.constant 0 : i32
    %c0_i32_0 = arith.constant 0 : i32
    return %c0_i32, %arg1 : i32, i32
  }
  func.func @transform_3(%arg0: i32, %arg1: i32, %arg2: memref<1xi32, #tpu.memory_space<smem>>) -> (i32, i32) {
    %c0_i32 = arith.constant 0 : i32
    %c0_i32_0 = arith.constant 0 : i32
    return %arg0, %c0_i32 : i32, i32
  }
  func.func @transform_4(%arg0: i32, %arg1: i32, %arg2: memref<1xi32, #tpu.memory_space<smem>>) -> (i32, i32) {
    %c0_i32 = arith.constant 0 : i32
    %c0_i32_0 = arith.constant 0 : i32
    return %arg0, %c0_i32 : i32, i32
  }
  func.func @transform_5(%arg0: i32, %arg1: i32, %arg2: memref<1xi32, #tpu.memory_space<smem>>) -> (i32, i32) {
    %c0_i32 = arith.constant 0 : i32
    %c0_i32_0 = arith.constant 0 : i32
    return %arg0, %c0_i32 : i32, i32
  }
  func.func @transform_6(%arg0: i32, %arg1: i32, %arg2: memref<1xi32, #tpu.memory_space<smem>>) -> (i32, i32) {
    %c0_i32 = arith.constant 0 : i32
    %c0_i32_0 = arith.constant 0 : i32
    return %arg0, %c0_i32 : i32, i32
  }
}

</mosaic_0001>

<bundles_post_ra>
// kernel: tpu_custom_call.1
= control target key start
LH: loop header
LB: loop body
LE: loop exit
PB: predicated region body
PF: predicated region fallthrough
CT: control target
= control target key end

     0   :  { %s1521_s0 = inlined_call_operand.<no memory space> [shape: s32[1], index: 0, kind: input, shape index: {}]   ;;  %s1522_s1 = inlined_call_operand.vmem [shape: bf16[32,64], index: 1, kind: input, shape index: {}]   ;;  %s1523_s2 = inlined_call_operand.hbm [shape: bf16[64,512], index: 2, kind: input, shape index: {}]   ;;  %s1524_s3 = inlined_call_operand.vmem [shape: f32[1,512], index: 3, kind: input, shape index: {}]   ;;  %s1525_s4 = inlined_call_operand.vmem [shape: s32[32,1], index: 4, kind: input, shape index: {}]   ;;  %s1526_s5 = inlined_call_operand.vmem [shape: f32[32,1], index: 5, kind: output, shape index: {0}]   ;;  %s1527_s6 = inlined_call_operand.vmem [shape: f32[32,1], index: 6, kind: output, shape index: {1}]   ;;  %s1528_s7 = inlined_call_operand.vmem [shape: s32[32,1], index: 7, kind: output, shape index: {2}]  }
   0x1   :  { %1531 = sst [smem:[#allocation15_spill]] %s1523_s2 }
   0x2   :  { %13 = sst [smem:[#allocation8]] %s1521_s0 }
   0x3   :  { %14 = vsyncpa [#allocation10], 0 }
   0x4   :  { %16 = vsyncpa [#allocation10 + $0x1], 0  ;;  %s1239_s26 = smov 0   ;;  %s1241_s27 = smov 0  }
   0x5   :  { %s1243_s28 = smov 0   ;;  %s1245_s29 = smov 0  }
   0x6   :  { %s1247_s30 = smov 0   ;;  %s1249_s8 = smov 0  }
   0x7   :  { %s1251_s9 = smov 0   ;;  %s1253_s10 = smov 0  }
   0x8 LB: > { %1532 = sst [smem:[#allocation12_spill]] %s1180_s9  ;;  %s917_s0 = sadd.s32 4294967295, %s1184_s10   ;;  %s1184_s10 = sphi %s1253_s10, %s22_s10   ;;  %s1180_s9 = sphi %s1251_s9, %s1543_s9   ;;  %s1176_s8 = sphi %s1249_s8, %s1548_s8   ;;  %s1172_s30 = sphi %s1247_s30, %s1541_s30   ;;  %s1168_s29 = sphi %s1245_s29, %s1547_s29   ;;  %s1164_s28 = sphi %s1243_s28, %s1546_s28   ;;  %s1160_s27 = sphi %s1241_s27, %s1545_s27   ;;  %s1156_s26 = sphi %s1239_s26, %s1544_s26  }
   0x9   : > { %s31_s11 = sadd.s32 1, %s1176_s8  ;;  %s34_s12 = sadd.s32 1, %s1180_s9 }
   0xa   : > { %p32_p0 = scmp.ge.s32.totalorder %s31_s11, 4  ;;  %s67_s13 = sadd.s32 1, %s1164_s28 }
   0xb   : > { %p74_p1 = scmp.ne.s32.totalorder %s1164_s28, %s1160_s27  ;;  %p75_p2 = scmp.eq.s32.totalorder %s1184_s10, 0 }
   0xc   : > { %s1550_s11 = smov (%p32_p0, %s31_s11), 0  ;;  %s1552_s12 = smov (!%p32_p0, %s34_s12), %s1180_s9 }
   0xd   : > { %1533 = sst [smem:[#allocation13_spill]] %s1550_s11  ;;  %s64_s14 = ssub.s32 %s1176_s8, %s1550_s11 }
   0xe   : > { %p36_p3 = scmp.ge.s32.totalorder %s1552_s12, 2  ;;  %p65_p4 = scmp.eq.s32.totalorder %s64_s14, 0 }
   0xf   : > { %p1289_p5 = por %p75_p2, %p74_p1  ;;  %p80_p6 = scmp.ne.s32.totalorder %s1160_s27, %s1156_s26 }
  0x10   : > { %s1554_s12 = smov (%p36_p3, %s1552_s12), 0  ;;  %p81_p7 = scmp.eq.s32.totalorder %s917_s0, 0 }
  0x11   : > { %1535 = sst [smem:[#allocation14_spill]] %s1554_s12  ;;  %p975_p8 = scmp.lt.s32.totalorder %s1184_s10, 8 }
  0x12   : > { %s1297_s16 = scalar_select %p65_p4, %s1164_s28, %s67_s13  }
  0x13   : > { %s243_s17 = sand.u32 1, %s1164_s28   ;;  %p1301_p9 = por %p81_p7, %p80_p6 }
  0x14   : > { %s921_s19 = sshll.u32 %s243_s17, 5  ;;  %s922_s20 = sshll.u32 %s1176_s8, 6 }
  0x15   : > { %s1537_s2 = sld [smem:[#allocation15_spill]]  ;;  %s247_s24 = scalar_lea.vmem [#allocation9], %s921_s19 }
  0x16   : > { %s253_s25 = sshll.u32 %s247_s24, 4  ;;  %p1313_p10 = pnand %p975_p8, %p1289_p5  ;;  %s1317_s25 = int_to_ptr.vmem [resolvable:$true] %s253_s25 }
  0x17   : > { %s1320_s0 = scalar_lea.sflag [#allocation10], %s243_s17 }
  0x18   : > { %p1090_p13 = pneg %p1313_p10 }
  0x1b   : > { %s1309_s23 = scalar_lea.hbm %s1537_s2, %s922_s20  ;;  %s1093_s19 = scalar_lea.hbm %s1537_s2, 2048 }
  0x1c   : > { %s1088_s13 = scalar_lea.hbm %s1309_s23, 512  ;;  %p1094_p2 = scmp.lt.u32.totalorder %s1309_s23, %s1537_s2 }
  0x1d   : > { %p1089_p12 = scmp.ne.s32.totalorder %s1309_s23, %s1088_s13  ;;  %p1095_p3 = scmp.lt.u32.totalorder %s1093_s19, %s1088_s13 }
  0x1e   : > { %p1097_p5 = scmp.lt.u32.totalorder %s1088_s13, %s1309_s23 }
  0x1f   : > { %p1091_p0 = pnand %p1090_p13, %p1089_p12  ;;  %p1096_p4 = por %p1095_p3, %p1094_p2 }
  0x21   : > { %p1092_p1 = pneg %p1091_p0  ;;  %p1098_p6 = por %p1097_p5, %p1096_p4 }
  0x23   : > { %p1099_p7 = pnand %p1098_p6, %p1092_p1 }
  0x25   : > { %1102 = shalt.err (!%p1099_p7)
}
  0x26   : > { %s1103_s17 = scalar_lea.vmem %s1317_s25, 512  ;;  %s1186_s22 = smov [#allocation9]  }
  0x27   : > { %p1104_p8 = scmp.ne.s32.totalorder %s1317_s25, %s1103_s17  ;;  %s1108_s24 = sshll.u32 %s1186_s22, 4  ;;  %s1109_s24 = int_to_ptr.vmem [resolvable:$false] %s1108_s24 }
  0x28   : > { %s1110_s14 = scalar_lea.vmem %s1109_s24, 1024  ;;  %p1111_p11 = scmp.lt.s32.totalorder %s1317_s25, %s1109_s24 }
  0x29   : > { %p1106_p12 = pnand %p1104_p8, %p1090_p13  ;;  %p1112_p2 = scmp.lt.s32.totalorder %s1110_s14, %s1103_s17 }
  0x2b   : > { %p1107_p0 = pneg %p1106_p12  ;;  %p1113_p3 = por %p1112_p2, %p1111_p11 }
  0x2d   : > { %p1114_p4 = pnand %p1113_p3, %p1107_p0 }
  0x2f   : > { %1117 = shalt.err (!%p1114_p4)
}
  0x30   : > { %s1187_s13 = smov 256   ;;  %s1188_s15 = smov 64  }
  0x31   : > { %s1189_s19 = smov 4   ;;  %p276_p13 = scmp.lt.s32.totalorder %s1184_s10, 9 }
  0x32   : > { %974 = dma.hbm_to_vmem [thread:$0]  (!%p1313_p10), %s1309_s23, 512, %s1317_s25, %s1320_s0, %s1187_s13, %s1188_s15, %s1189_s19  }
  0x33   : > { %p1539_p1 = scmp.ge.s32.totalorder %s1184_s10, 1 }
  0x35   : > { %p277_p5 = pnand %p1539_p1, %p276_p13 }
  0x36   : > { %s282_s20 = sand.u32 (!%p277_p5), 1, %s1160_s27  }
  0x37   : > { %280 = sbr.rel (%p277_p5) target bundleno = 1117 (0x45d), region = 36  ;;  %s924_s21 = sshll.u32 (!%p277_p5), %s282_s20, 5 }
  0x38   : > { %s283_s17 = scalar_lea.sflag (!%p277_p5), [#allocation10], %s282_s20  ;;  %s1352_s22 = scalar_lea.vmem (!%p277_p5), [#allocation9], %s924_s21 }
  0x3e   : > { %1151 = dma.done.wait (%p1301_p9), %s283_s17, 512  }
  0x3f   : > { %1153 = vsyncadd (%p1301_p9), %s283_s17, 4294966784  ;;  %s925_s23 = sshll.u32 %s1172_s30, 1  ;;  %p344_p10 = scmp.lt.s32.totalorder %s1168_s29, 3 }
  0x40   : > { %p339_p11 = scmp.lt.s32.totalorder %s925_s23, 3  ;;  %p935_p9 = scmp.ne.s32.totalorder %s1168_s29, 0 }
  0x41   : > { %s1361_s25 = scalar_select %p344_p10, %s1168_s29, 3 }
  0x42   : > { %s1556_s23 = smov (!%p339_p11, %s925_s23), 3  ;;  %375 = sbr.rel (%p935_p9) target bundleno = 73 (0x49), region = 44 }
  0x43   : > { %s926_s14 = sshll.u32 %s1556_s23, 2  ;;  %s928_s13 = sshll.u32 %s1556_s23, 3  ;;  %vm376_vm0 = vcmask (!%p935_p9), 7168   ;;  %v1190_v0 = vmov (!%p935_p9), -inf   ;;  %v1191_v1 = vmov (!%p935_p9), 0.0   ;;  %v1192_v2 = vmov (!%p935_p9), 0  }
  0x44   : > { %s1370_s18 = scalar_lea.vmem %s1522_s1, %s926_s14  ;;  %s1375_s17 = scalar_lea.vmem %s1525_s4, %s928_s13  ;;  %377 = vst.msk [vmem:[#allocation2] sm:$0xff] (!%p935_p9), %vm376_vm0, %v1190_v0  ;;  %378 = vst.msk [vmem:[#allocation2 + $0x8] sm:$0xff] (!%p935_p9), %vm376_vm0, %v1190_v0 }
  0x45   : > { %s1380_s11 = scalar_lea.vmem %s1526_s5, %s928_s13  ;;  %s1385_s0 = scalar_lea.vmem %s1527_s6, %s928_s13  ;;  %383 = vst.msk [vmem:[#allocation5] sm:$0xff] (!%p935_p9), %vm376_vm0, %v1190_v0  ;;  %384 = vst.msk [vmem:[#allocation5 + $0x8] sm:$0xff] (!%p935_p9), %vm376_vm0, %v1190_v0 }
  0x46   : > { %s1390_s14 = scalar_lea.vmem %s1528_s7, %s928_s13  ;;  %379 = vst.msk [vmem:[#allocation3] sm:$0xff] (!%p935_p9), %vm376_vm0, %v1191_v1  ;;  %380 = vst.msk [vmem:[#allocation3 + $0x8] sm:$0xff] (!%p935_p9), %vm376_vm0, %v1191_v1 }
  0x47   : > { %381 = vst.msk [vmem:[#allocation4] sm:$0xff] (!%p935_p9), %vm376_vm0, %v1191_v1  ;;  %382 = vst.msk [vmem:[#allocation4 + $0x8] sm:$0xff] (!%p935_p9), %vm376_vm0, %v1191_v1 }
  0x48   : > { %385 = vst.msk [vmem:[#allocation6] sm:$0xff] (!%p935_p9), %vm376_vm0, %v1192_v2  ;;  %386 = vst.msk [vmem:[#allocation6 + $0x8] sm:$0xff] (!%p935_p9), %vm376_vm0, %v1192_v2 }
  0x49 PF: > { %v1051_v3 = vld [vmem:[%s1352_s22] sm:$0xff]   ;;  %v1193_v4 = vmov 0.0   ;;  %v1052_v5 = vld [vmem:[%s1352_s22 + $0x8] sm:$0xff]   ;;  %vm1194_vm1 = vmmov 0   ;;  %v1053_v6 = vld [vmem:[%s1352_s22 + $0x10] sm:$0xff]   ;;  %vm433_vm2 = vcmask 523264   ;;  %s1540_s12 = scalar_lea.vmem %s1524_s3, %s1361_s25  ;;  %v478_v23 = vlaneseq }
  0x4a   : > { %957 = vmatprep.subr.bf16.mxu0 %v1193_v4  ;;  %965 = vmatprep.mubr.msk.bf16.mxu0 %vm1194_vm1, %v1193_v4  ;;  %v1054_v7 = vld [vmem:[%s1352_s22 + $0x18] sm:$0xff]   ;;  %v1055_v8 = vld [vmem:[%s1370_s18] sm:$0xff]   ;;  %v1195_v16 = vmov 0   ;;  %vm510_vm3 = vcmask 7168   ;;  %s557_s22 = sld [smem:[#allocation8]]  ;;  %s943_s25 = sshll.u32 %s1168_s29, 7 }
  0x4b   : > { %958 = vmatpush3.bf16.msra.mxu0 %v1051_v3  ;;  %v936_v9 = vld [vmem:[%s1540_s12] ss:$0 sm:$0xff]  ;;  %1049 = vset.pattern.permute.xlu1 %v1195_v16  ;;  %v1414_v20 = vld [vmem:[#allocation2 + $0x8] sm:$0xff]  ;;  %v479_v24 = vand.u32 127, %v478_v23  ;;  %v481_v25 = vstv %s943_s25  ;;  %s944_s24 = sshll.u32 %s1172_s30, 4  ;;  %v484_v27 = vshrl.u32 %v478_v23, 7 }
  0x4c   : > { %959 = vmatprep.subr.bf16.mxu0 %v1193_v4  ;;  %1050 = vset.pattern.permute.xlu0 %v1195_v16  ;;  %v1409_v17 = vld [vmem:[#allocation2] sm:$0xff]  ;;  %v487_v28 = vstv %s944_s24  ;;  %p947_p6 = scmp.ne.s32.totalorder %s1168_s29, 3 }
  0x4d   : > { %v1427_v26 = vadd.s32 %v481_v25, %v479_v24  ;;  %v1429_v29 = vadd.s32 %v487_v28, %v484_v27  ;;  %v485_v31 = vadd.s32 8, %v484_v27  ;;  %s681_s30 = sld [smem:[#allocation8]] (!%p947_p6) }
  0x4f   : > { %960 = vmatpush3.bf16.msra.mxu0 %v1052_v5  ;;  %v560_v30 = vmul.u32 2246822519, %v1427_v26  ;;  %v563_v34 = vmul.u32 2654435761, %v1429_v29  ;;  %v1433_v35 = vadd.s32 %v487_v28, %v485_v31 }
  0x50   : > { %961 = vmatprep.subr.bf16.mxu0 %v1193_v4  ;;  %s558_s13 = smul.u32 3266489917, %s557_s22 }
  0x51   : > { %v564_v37 = vmul.u32 2654435761, %v1433_v35 }
  0x52   : > { %s559_s15 = sadd.s32 668265263, %s558_s13 }
  0x53   : > { %962 = vmatpush3.bf16.msra.mxu0 %v1053_v6  ;;  %v561_v32 = vstv %s559_s15  ;;  %s682_s19 = smul.u32 (!%p947_p6), 3266489917, %s681_s30 }
  0x54   : > { %963 = vmatprep.subr.bf16.mxu0 %v1193_v4  ;;  %v562_v33 = vxor.u32 %v561_v32, %v560_v30 }
  0x55   : > { %s683_s18 = sadd.s32 (!%p947_p6), 668265263, %s682_s19 }
  0x56   : > { %v565_v36 = vxor.u32 %v563_v34, %v562_v33  ;;  %v566_v39 = vxor.u32 %v564_v37, %v562_v33 }
  0x57   : > { %964 = vmatpush3.bf16.msra.mxu0 %v1054_v7 }
  0x58   : > { %v567_v38 = vshrl.u32 %v565_v36, 16  ;;  %v568_v41 = vshrl.u32 %v566_v39, 16 }
  0x5a   : > { %966 = vmatmul.mubr.msk.bf16.vlgmr.msra.gmra.mrb[0].mxu0 %vm433_vm2, %v1055_v8  ;;  %v569_v40 = vxor.u32 %v567_v38, %v565_v36  ;;  %v570_v43 = vxor.u32 %v568_v41, %v566_v39  ;;  %v643_v39 = vld [vmem:[#allocation5] sm:$0xff] }
  0x5c   : > { %v571_v42 = vmul.u32 2146121005, %v569_v40  ;;  %v572_v45 = vmul.u32 2146121005, %v570_v43 }
  0x5e   : > { %v573_v44 = vshrl.u32 %v571_v42, 15  ;;  %v574_v47 = vshrl.u32 %v572_v45, 15 }
  0x60   : > { %v575_v46 = vxor.u32 %v573_v44, %v571_v42  ;;  %v576_v49 = vxor.u32 %v574_v47, %v572_v45  ;;  %v1451_v44 = vld [vmem:[#allocation5 + $0x8] sm:$0xff] }
  0x62   : > { %v577_v48 = vmul.u32 2221713035, %v575_v46  ;;  %v578_v51 = vmul.u32 2221713035, %v576_v49  ;;  %v492_v46 = vld [vmem:[%s1375_s17] sm:$0xff] }
  0x64   : > { %v579_v50 = vshrl.u32 %v577_v48, 16  ;;  %v580_v53 = vshrl.u32 %v578_v51, 16 }
  0x66   : > { %v581_v52 = vxor.u32 %v579_v50, %v577_v48  ;;  %v582_v55 = vxor.u32 %v580_v53, %v578_v51  ;;  %v491_v51 = vld [vmem:[#allocation4 + $0x8] sm:$0xff] }
  0x68   : > { %v583_v54 = vshrl.u32 %v581_v52, 9  ;;  %v584_v57 = vshrl.u32 %v582_v55, 9 }
  0x6a   : > { %v585_v56 = vor.u32 1065353217, %v583_v54  ;;  %v586_v59 = vor.u32 1065353217, %v584_v57 }
  0x6c   : > { %v945_v58 = vadd.f32 -1.0, %v585_v56  ;;  %v946_v60 = vadd.f32 -1.0, %v586_v59 }
  0x6e   : > { %1056 = vlog2.f32 %v945_v58 }
  0x6f   : > { %1058 = vlog2.f32 %v946_v60 }
  0x78   : > { %v1057_v61 = vpop.eup %1056 }
  0x79   : > { %v592_v62 = vmul.f32 0.6931472, %v1057_v61  ;;  %v1059_v63 = vpop.eup %1058 }
  0x7a   : > { %v594_v1 = vmul.f32 0.6931472, %v1059_v63 }
  0x7b   : > { %v595_v0 = vsub.f32 0.0, %v592_v62 }
  0x7c   : > { %v596_v5 = vsub.f32 0.0, %v594_v1  ;;  %v538_v1 = vld [vmem:[#allocation3 + $0x8] sm:$0xff] }
  0x7d   : > { %1060 = vrcp.f32 %v595_v0 }
 0x12d   : > { %v471_v10 = vpop.f32.mrb[0].mxu0 }
 0x12e   : > { %v1403_v11 = vadd.f32 %v936_v9, %v471_v10  ;;  %v967_v12 = vpop.f32.mrb[1].mxu0 }
 0x12f   : > { %v474_v13 = vpop.f32.mrb[2].mxu0 }
 0x130   : > { %513 = vmax.xlane.f32.xlu0 %v1403_v11  ;;  %v968_v14 = vpop.f32.mrb[3].mxu0  ;;  %v1406_v15 = vadd.f32 %v936_v9, %v474_v13  ;;  %v1061_v9 = vpop.eup %1060 }
 0x134   : > { %515 = vmax.xlane.f32.xlu0 %v1406_v15 }
 0x1bd   : > { %v514_v18 = vpop.xlane.xlu0 %513 }
 0x1be   : > { %v1412_v19 = vmax.f32 %v1409_v17, %v514_v18  ;;  %v493_v18 = vld [vmem:[%s1375_s17 + $0x8] sm:$0xff] }
 0x1c0   : > { %555 = vst.msk [vmem:[#allocation2] sm:$0xff] %vm510_vm3, %v1412_v19  ;;  %523 = vperm.xlu1 %1049, %v1412_v19   ;;  %v539_v63 = vsub.f32 %v1409_v17, %v1412_v19 }
 0x1c1   : > { %v516_v21 = vpop.xlane.xlu0 %515 }
 0x1c2   : > { %v1420_v22 = vmax.f32 %v1414_v20, %v516_v21 }
 0x1c4   : > { %556 = vst.msk [vmem:[#allocation2 + $0x8] sm:$0xff] %vm510_vm3, %v1420_v22  ;;  %528 = vperm.xlu1 %1049, %v1420_v22   ;;  %v540_v60 = vsub.f32 %v1414_v20, %v1420_v22  ;;  %v490_v20 = vld [vmem:[#allocation4] sm:$0xff] }
 0x1c6   : > { %v543_v61 = vmul.f32 1.442695, %v540_v60 }
 0x23f   : > { %v524_v2 = vpop.permute.xlu1 %523 }
 0x240   : > { %v531_v3 = vsub.f32 %v1403_v11, %v524_v2 }
 0x242   : > { %v533_v4 = vmul.f32 1.442695, %v531_v3  ;;  %v541_v3 = vmul.f32 1.442695, %v539_v63 }
 0x243   : > { %v529_v6 = vpop.permute.xlu1 %528 }
 0x244   : > { %1062 = vpow2.f32 %v533_v4  ;;  %v532_v7 = vsub.f32 %v1406_v15, %v529_v6  ;;  %v647_v4 = vld [vmem:[#allocation6] sm:$0xff] }
 0x245   : > { %1064 = vrcp.f32 %v596_v5 }
 0x246   : > { %v535_v8 = vmul.f32 1.442695, %v532_v7 }
 0x248   : > { %1066 = vpow2.f32 %v535_v8 }
 0x24e   : > { %v1442_v10 = vpop.eup %1062 }
 0x24f   : > { %v599_v12 = vmul.f32 %v1442_v10, %v1061_v9  ;;  %v1065_v13 = vpop.eup %1064 }
 0x251   : > { %601 = vmax.xlane.f32.xlu0 %v599_v12 }
 0x252   : > { %v1067_v14 = vpop.eup %1066 }
 0x253   : > { %v600_v16 = vmul.f32 %v1067_v14, %v1065_v13  ;;  %v537_v13 = vld [vmem:[#allocation3] sm:$0xff] }
 0x255   : > { %603 = vmax.xlane.f32.xlu1 %v600_v16 }
 0x266   : > { %498 = vperm.xlu1 %1049, %v493_v18   ;;  %v648_v18 = vld [vmem:[#allocation6 + $0x8] sm:$0xff] }
 0x2de   : > { %v602_v21 = vpop.xlane.xlu0 %601 }
 0x2df   : > { %vm605_vm4 = vcmp.ge.f32.partialorder %v599_v12, %v602_v21  ;;  %1068 = vlog2.f32 %v602_v21 }
 0x2e0   : > { %v607_v23 = vsel %vm605_vm4, %v1427_v26, 4294967295 }
 0x2e1   : > { %v610_v24 = vshra.s32 %v607_v23, 16  ;;  %v609_v47 = vand.u32 65535, %v607_v23 }
 0x2e2   : > { %v604_v25 = vpop.xlane.xlu1 %603 }
 0x2e3   : > { %vm606_vm5 = vcmp.ge.f32.partialorder %v600_v16, %v604_v25  ;;  %1070 = vlog2.f32 %v604_v25  ;;  %v612_v27 = vcvt.s32.f32 %v610_v24  ;;  %v611_v49 = vcvt.s32.f32 %v609_v47  ;;  %v664_v47 = vld [vmem:[#allocation2 + $0x8] sm:$0xff] (!%p947_p6) }
 0x2e4   : > { %v608_v28 = vsel %vm606_vm5, %v1427_v26, 4294967295  ;;  %1072 = vpow2.f32 %v543_v61 }
 0x2e5   : > { %613 = vmax.xlane.f32.xlu0 %v612_v27  ;;  %v624_v30 = vshra.s32 %v608_v28, 16  ;;  %v623_v56 = vand.u32 65535, %v608_v28  ;;  %1074 = vpow2.f32 %v541_v3 }
 0x2e6   : > { %v499_v31 = vpop.permute.xlu1 %498 }
 0x2e7   : > { %vm501_vm6 = vcmp.eq.s32.totalorder %v1427_v26, %v499_v31  ;;  %v626_v32 = vcvt.s32.f32 %v624_v30  ;;  %v625_v58 = vcvt.s32.f32 %v623_v56 }
 0x2e8   : > { %v503_v33 = vsel %vm501_vm6, %v1406_v15, 0.0 }
 0x2e9   : > { %v1069_v36 = vpop.eup %1068  ;;  %506 = vadd.xlane.f32.xlu1 %v503_v33  ;;  %627 = vmax.xlane.f32.xlu0 %v626_v32 }
 0x2ea   : > { %v638_v38 = vmul.f32 0.6931472, %v1069_v36 }
 0x2ec   : > { %v641_v40 = vadd.f32 %v638_v38, %v1412_v19  ;;  %v686_v38 = vstv (!%p947_p6), %s683_s18 }
 0x2ed   : > { %v1071_v41 = vpop.eup %1070 }
 0x2ee   : > { %vm645_vm7 = vcmp.gt.f32.partialorder %v641_v40, %v643_v39  ;;  %v655_v42 = vmax.f32 %v643_v39, %v641_v40  ;;  %v640_v43 = vmul.f32 0.6931472, %v1071_v41  ;;  %v1073_v0 = vpop.eup %1072 }
 0x2ef   : > { %v546_v6 = vmul.f32 %v1073_v0, %v538_v1 }
 0x2f0   : > { %657 = vst.msk [vmem:[#allocation5] sm:$0xff] %vm510_vm3, %v655_v42  ;;  %v1455_v45 = vadd.f32 %v640_v43, %v1420_v22  ;;  %v663_v42 = vld [vmem:[#allocation2] sm:$0xff] (!%p947_p6) }
 0x2f2   : > { %vm646_vm8 = vcmp.gt.f32.partialorder %v1455_v45, %v1451_v44  ;;  %v656_v15 = vmax.f32 %v1451_v44, %v1455_v45 }
 0x2f4   : > { %658 = vst.msk [vmem:[#allocation5 + $0x8] sm:$0xff] %vm510_vm3, %v656_v15 }
 0x2ff   : > { %495 = vperm.xlu0 %1050, %v492_v46  }
 0x372   : > { %v614_v48 = vpop.xlane.xlu0 %613 }
 0x373   : > { %vm615_vm9 = vcmp.eq.f32.partialorder %v612_v27, %v614_v48  ;;  %v620_v62 = vcvt.f32.s32 %v614_v48 }
 0x374   : > { %v616_v50 = vsel %vm615_vm9, %v611_v49, -inf }
 0x375   : > { %617 = vmax.xlane.f32.xlu1 %v616_v50 }
 0x376   : > { %v507_v52 = vpop.xlane.xlu1 %506  ;;  %v628_v54 = vpop.xlane.xlu0 %627 }
 0x377   : > { %v509_v53 = vadd.f32 %v507_v52, %v491_v51  ;;  %vm629_vm11 = vcmp.eq.f32.partialorder %v626_v32, %v628_v54  ;;  %v634_v19 = vcvt.f32.s32 %v628_v54 }
 0x378   : > { %v630_v59 = vsel %vm629_vm11, %v625_v58, -inf }
 0x379   : > { %512 = vst.msk [vmem:[#allocation4 + $0x8] sm:$0xff] %vm510_vm3, %v509_v53  ;;  %549 = vadd.xlane.f32.xlu1 %v1067_v14  ;;  %v635_v14 = vshll.u32 %v634_v19, 16 }
 0x37e   : > { %v496_v55 = vpop.permute.xlu0 %495 }
 0x37f   : > { %vm500_vm10 = vcmp.eq.s32.totalorder %v1427_v26, %v496_v55 }
 0x380   : > { %v502_v57 = vsel %vm500_vm10, %v1403_v11, 0.0  ;;  %v621_v11 = vshll.u32 %v620_v62, 16  ;;  %v674_v52 = vld [vmem:[#allocation4 + $0x8] sm:$0xff] (!%p947_p6) }
 0x381   : > { %504 = vadd.xlane.f32.xlu0 %v502_v57 }
 0x385   : > { %631 = vmax.xlane.f32.xlu0 %v630_v59 }
 0x389   : > { %547 = vadd.xlane.f32.xlu0 %v1442_v10  ;;  %v1075_v10 = vpop.eup %1074 }
 0x38a   : > { %v545_v23 = vmul.f32 %v1075_v10, %v537_v13  ;;  %v716_v13 = vld [vmem:[#allocation5 + $0x8] sm:$0xff] (!%p947_p6) }
 0x402   : > { %v618_v26 = vpop.xlane.xlu1 %617 }
 0x403   : > { %v619_v2 = vcvt.f32.s32 %v618_v26 }
 0x405   : > { %v622_v5 = vadd.s32 %v621_v11, %v619_v2 }
 0x406   : > { %v550_v7 = vpop.xlane.xlu1 %549 }
 0x407   : > { %v649_v8 = vsel %vm645_vm7, %v622_v5, %v647_v4  ;;  %v552_v9 = vadd.f32 %v550_v7, %v546_v6 }
 0x408   : > { %651 = vst.msk [vmem:[#allocation6] sm:$0xff] %vm510_vm3, %v649_v8 }
 0x409   : > { %554 = vst.msk [vmem:[#allocation3 + $0x8] sm:$0xff] %vm510_vm3, %v552_v9 }
 0x40e   : > { %v505_v17 = vpop.xlane.xlu0 %504 }
 0x40f   : > { %v508_v22 = vadd.f32 %v505_v17, %v490_v20  ;;  %v679_v30 = vld [vmem:[#allocation6] sm:$0xff] (!%p947_p6) }
 0x410   : > { %735 = vst.msk [vmem:[%s1390_s14] sm:$0xff] (!%p947_p6), %vm510_vm3, %v679_v30  ;;  %v666_v31 = vld [vmem:[#allocation3 + $0x8] sm:$0xff] (!%p947_p6)  ;;  %v684_v33 = vmul.u32 (!%p947_p6), 2246822519, %v679_v30 }
 0x411   : > { %511 = vst.msk [vmem:[#allocation4] sm:$0xff] %vm510_vm3, %v508_v22  ;;  %v715_v22 = vld [vmem:[#allocation5] sm:$0xff] (!%p947_p6) }
 0x412   : > { %v632_v12 = vpop.xlane.xlu0 %631  ;;  %v687_v39 = vxor.u32 (!%p947_p6), %v686_v38, %v684_v33 }
 0x413   : > { %v633_v16 = vcvt.f32.s32 %v632_v12  ;;  %662 = sbr.rel (%p947_p6) target bundleno = 1117 (0x45d), region = 48 }
 0x414   : > { %v689_v44 = vxor.u32 (!%p947_p6), %v687_v39, %v563_v34 }
 0x415   : > { %v636_v21 = vadd.s32 %v635_v14, %v633_v16 }
 0x416   : > { %v548_v24 = vpop.xlane.xlu0 %547  ;;  %v691_v49 = vshrl.u32 (!%p947_p6), %v689_v44, 16 }
 0x417   : > { %v650_v25 = vsel %vm646_vm8, %v636_v21, %v648_v18  ;;  %v551_v27 = vadd.f32 %v548_v24, %v545_v23 }
 0x418   : > { %652 = vst.msk [vmem:[#allocation6 + $0x8] sm:$0xff] %vm510_vm3, %v650_v25  ;;  %v673_v46 = vld [vmem:[#allocation4] sm:$0xff] (!%p947_p6)  ;;  %v693_v54 = vxor.u32 (!%p947_p6), %v691_v49, %v689_v44 }
 0x419   : > { %553 = vst.msk [vmem:[#allocation3] sm:$0xff] %vm510_vm3, %v551_v27 }
 0x41a   : > { %v695_v29 = vmul.u32 2146121005, %v693_v54 }
 0x41c   : > { %v697_v35 = vshrl.u32 %v695_v29, 15 }
 0x41e   : > { %v699_v58 = vxor.u32 %v697_v35, %v695_v29 }
 0x41f   : > { %v680_v32 = vld [vmem:[#allocation6 + $0x8] sm:$0xff] }
 0x420   : > { %v665_v28 = vld [vmem:[#allocation3] sm:$0xff]  ;;  %736 = vst.msk [vmem:[%s1390_s14 + $0x8] sm:$0xff] %vm510_vm3, %v680_v32  ;;  %v685_v36 = vmul.u32 2246822519, %v680_v32  ;;  %v701_v60 = vmul.u32 2221713035, %v699_v58 }
 0x421   : > { %1076 = vlog2.f32 %v665_v28 }
 0x422   : > { %1078 = vlog2.f32 %v666_v31  ;;  %v688_v40 = vxor.u32 %v686_v38, %v685_v36  ;;  %v703_v62 = vshrl.u32 %v701_v60, 16 }
 0x424   : > { %v690_v45 = vxor.u32 %v688_v40, %v564_v37  ;;  %v705_v0 = vxor.u32 %v703_v62, %v701_v60 }
 0x426   : > { %v692_v51 = vshrl.u32 %v690_v45, 16  ;;  %v707_v1 = vshrl.u32 %v705_v0, 9 }
 0x428   : > { %v694_v56 = vxor.u32 %v692_v51, %v690_v45  ;;  %v709_v2 = vor.u32 1065353217, %v707_v1 }
 0x42a   : > { %v696_v57 = vmul.u32 2146121005, %v694_v56  ;;  %v948_v4 = vadd.f32 -1.0, %v709_v2 }
 0x42b   : > { %v1077_v41 = vpop.eup %1076 }
 0x42c   : > { %v668_v43 = vmul.f32 0.6931472, %v1077_v41  ;;  %v1079_v15 = vpop.eup %1078  ;;  %v698_v37 = vshrl.u32 %v696_v57, 15  ;;  %1080 = vlog2.f32 %v948_v4 }
 0x42d   : > { %v670_v50 = vmul.f32 0.6931472, %v1079_v15 }
 0x42e   : > { %v671_v48 = vadd.f32 %v668_v43, %v663_v42  ;;  %v700_v59 = vxor.u32 %v698_v37, %v696_v57 }
 0x42f   : > { %v672_v55 = vadd.f32 %v670_v50, %v664_v47 }
 0x430   : > { %v675_v53 = vsub.f32 %v673_v46, %v671_v48  ;;  %v702_v61 = vmul.u32 2221713035, %v700_v59 }
 0x431   : > { %v676_v34 = vsub.f32 %v674_v52, %v672_v55 }
 0x432   : > { %677 = vst.msk [vmem:[%s1380_s11] sm:$0xff] %vm510_vm3, %v675_v53  ;;  %v704_v63 = vshrl.u32 %v702_v61, 16 }
 0x433   : > { %678 = vst.msk [vmem:[%s1380_s11 + $0x8] sm:$0xff] %vm510_vm3, %v676_v34 }
 0x434   : > { %v706_v26 = vxor.u32 %v704_v63, %v702_v61 }
 0x436   : > { %v708_v11 = vshrl.u32 %v706_v26, 9  ;;  %v1081_v6 = vpop.eup %1080 }
 0x437   : > { %v718_v8 = vmul.f32 0.6931472, %v1081_v6 }
 0x438   : > { %v710_v3 = vor.u32 1065353217, %v708_v11 }
 0x439   : > { %v721_v20 = vsub.f32 0.0, %v718_v8 }
 0x43a   : > { %v949_v5 = vadd.f32 -1.0, %v710_v3 }
 0x43c   : > { %1082 = vlog2.f32 %v949_v5 }
 0x43d   : > { %1084 = vlog2.f32 %v721_v20 }
 0x446   : > { %v1083_v7 = vpop.eup %1082 }
 0x447   : > { %v720_v9 = vmul.f32 0.6931472, %v1083_v7  ;;  %v1085_v19 = vpop.eup %1084 }
 0x448   : > { %v724_v12 = vmul.f32 0.6931472, %v1085_v19 }
 0x449   : > { %v722_v17 = vsub.f32 0.0, %v720_v9 }
 0x44a   : > { %v727_v16 = vadd.f32 %v724_v12, %v715_v22 }
 0x44b   : > { %1086 = vlog2.f32 %v722_v17 }
 0x44c   : > { %v729_v21 = vsub.f32 %v727_v16, %v671_v48 }
 0x44e   : > { %731 = vst.msk [vmem:[%s1385_s0] sm:$0xff] %vm510_vm3, %v729_v21 }
 0x455   : > { %v1087_v10 = vpop.eup %1086 }
 0x456   : > { %v726_v14 = vmul.f32 0.6931472, %v1087_v10 }
 0x458   : > { %v728_v18 = vadd.f32 %v726_v14, %v716_v13 }
 0x45a   : > { %v730_v23 = vsub.f32 %v728_v18, %v672_v55 }
 0x45c   : > { %732 = vst.msk [vmem:[%s1385_s0 + $0x8] sm:$0xff] %vm510_vm3, %v730_v23 }
 0x45d PF: > { %s22_s10 = sadd.s32 1, %s1184_s10   ;;  %s1541_s30 = sld [smem:[#allocation12_spill]] }
 0x45e   : > { %p19_p7 = scmp.ge.s32.totalorder %s22_s10, 10   ;;  %s1542_s11 = sld [smem:[#allocation13_spill]] }
 0x45f   : > { %s1543_s9 = sld [smem:[#allocation14_spill]]  ;;  %s1544_s26 = smov %s1160_s27 }
 0x460   : > { %s1545_s27 = smov %s1164_s28  ;;  %s1546_s28 = smov %s1297_s16 }
 0x461   : > { %s1547_s29 = smov %s1176_s8  ;;  %21 = sbr.rel (!%p19_p7) target bundleno = 8 (0x8), region = 117 }
 0x464   : > { %s1548_s8 = smov %s1542_s11 }
 0x468   :  { %793 = vsyncpa [#allocation10], 1 }
 0x469   :  { %795 = vsyncpa [#allocation10 + $0x1], 1 }

</bundles_post_ra>
